<compile_context>
chip_gen: v7x
topology: tpu7x:2x2x1
jax: 0.10.0
libtpu: 0.0.40
codegen_flags: <defaults>
</compile_context>

<pallas_src>
import functools

import numpy as np
import jax
import jax.numpy as jnp
from jax import lax
from jax.experimental import pallas as pl
from jax.experimental.pallas import tpu as pltpu

VMEM_SPEC = pl.BlockSpec(memory_space=pltpu.MemorySpace.VMEM)
VMEM_LIMIT = 32 * 1024 * 1024
LANE = 128
BATCH_PAD = 16          # bf16-native (16, 128) tile


def _round_up(x, m):
    return (x + m - 1) // m * m


def _pick_div(n, target):
    """Largest divisor of n that is <= target (>= 1)."""
    c = max(1, min(n, target))
    while n % c:
        c -= 1
    return c


def _full_spec(shape):
    return pl.BlockSpec(shape, lambda *_: (0,) * len(shape))


# ---------------------------------------------------------------------------
# Pallas kernels
# ---------------------------------------------------------------------------
def _proj_embed_kernel(x_ref, wf_ref, wb_ref, bf_ref, bb_ref, gif_ref, gib_ref):
    """Hoisted input projection for GRU layer 0, both directions. Output bf16."""
    x = x_ref[...]
    gif_ref[...] = (jnp.dot(x, wf_ref[...], preferred_element_type=jnp.float32)
                    + bf_ref[...]).astype(gif_ref.dtype)
    gib_ref[...] = (jnp.dot(x, wb_ref[...], preferred_element_type=jnp.float32)
                    + bb_ref[...]).astype(gib_ref.dtype)


def _proj_hidden_kernel(xf_ref, xb_ref, wf_ref, wb_ref, bf_ref, bb_ref,
                        gif_ref, gib_ref):
    """Hoisted input projection for GRU layers >= 1.

    Previous layer's fwd/bwd outputs are lane-concatenated inside the kernel so
    each direction is a single K=2*HP dot against a stacked weight.
    """
    x = jnp.concatenate([xf_ref[...], xb_ref[...]], axis=-1)   # (R, 2*HP) bf16
    gif_ref[...] = (jnp.dot(x, wf_ref[...], preferred_element_type=jnp.float32)
                    + bf_ref[...]).astype(gif_ref.dtype)
    gib_ref[...] = (jnp.dot(x, wb_ref[...], preferred_element_type=jnp.float32)
                    + bb_ref[...]).astype(gib_ref.dtype)


def _fused_gates(gif, gib, gh, hf, hb, hp):
    """GRU gates for both directions from one fused gh = [hf|hb] @ blockdiag(Whh^T).

    Gate order (PyTorch): r, z, n.  gif/gib already contain x@W_ih^T + b_ih (bf16);
    gh contains h@W_hh^T + b_hh (f32): fwd in cols 0:3hp, bwd in cols 3hp:6hp.
    """
    rf = jax.nn.sigmoid(gif[:, 0:hp] + gh[:, 0:hp])
    zf = jax.nn.sigmoid(gif[:, hp:2 * hp] + gh[:, hp:2 * hp])
    nf = jnp.tanh(gif[:, 2 * hp:3 * hp] + rf * gh[:, 2 * hp:3 * hp])
    hf_new = (1.0 - zf) * nf + zf * hf

    rb = jax.nn.sigmoid(gib[:, 0:hp] + gh[:, 3 * hp:4 * hp])
    zb = jax.nn.sigmoid(gib[:, hp:2 * hp] + gh[:, 4 * hp:5 * hp])
    nb = jnp.tanh(gib[:, 2 * hp:3 * hp] + rb * gh[:, 5 * hp:6 * hp])
    hb_new = (1.0 - zb) * nb + zb * hb
    return hf_new, hb_new


def _bigru_seq_kernel(gif_ref, gib_ref, whh_ref, bhh_ref, outf_ref, outb_ref,
                      h_scr, *, hp, tc, t_valid):
    """Fused bidirectional GRU over one time chunk; emits fwd/bwd bf16 sequences."""
    c = pl.program_id(0)
    nc = pl.num_programs(0)

    @pl.when(c == 0)
    def _():
        h_scr[...] = jnp.zeros_like(h_scr)

    bhh = bhh_ref[...]

    def step(t, carry):
        hf, hb = carry
        lhs = jnp.concatenate([hf, hb], axis=-1).astype(jnp.bfloat16)
        gh = jnp.dot(lhs, whh_ref[...], preferred_element_type=jnp.float32) + bhh
        tb = tc - 1 - t                    # backward dir walks the chunk in reverse
        hf_new, hb_new = _fused_gates(gif_ref[t], gib_ref[tb], gh, hf, hb, hp)
        # Mask padded time steps (T padded up to a multiple of tc).
        hf_new = jnp.where(c * tc + t < t_valid, hf_new, hf)
        hb_new = jnp.where((nc - 1 - c) * tc + tb < t_valid, hb_new, hb)
        outf_ref[t] = hf_new.astype(outf_ref.dtype)
        outb_ref[tb] = hb_new.astype(outb_ref.dtype)
        return hf_new, hb_new

    hf, hb = lax.fori_loop(0, tc, step, (h_scr[:, 0:hp], h_scr[:, hp:2 * hp]),
                           unroll=min(tc, 4))
    h_scr[:, 0:hp] = hf
    h_scr[:, hp:2 * hp] = hb


def _bigru_last_kernel(gif_ref, gib_ref, whh_ref, bhh_ref, last_ref,
                       h_scr, *, hp, tc, t_valid):
    """Final GRU layer: only emit the (Bp, 2*HP) last-position features."""
    c = pl.program_id(0)
    nc = pl.num_programs(0)

    @pl.when(c == 0)
    def _():
        h_scr[...] = jnp.zeros_like(h_scr)
        last_ref[...] = jnp.zeros_like(last_ref)

    bhh = bhh_ref[...]

    def step(t, carry):
        hf, hb = carry
        lhs = jnp.concatenate([hf, hb], axis=-1).astype(jnp.bfloat16)
        gh = jnp.dot(lhs, whh_ref[...], preferred_element_type=jnp.float32) + bhh
        tb = tc - 1 - t
        hf_new, hb_new = _fused_gates(gif_ref[t], gib_ref[tb], gh, hf, hb, hp)
        tf_g = c * tc + t
        tb_g = (nc - 1 - c) * tc + tb
        hf_new = jnp.where(tf_g < t_valid, hf_new, hf)
        hb_new = jnp.where(tb_g < t_valid, hb_new, hb)

        # out[:, -1, :H]  = fwd state after processing time T-1.
        # out[:, -1, H:]  = bwd state after its first valid step (also time T-1).
        @pl.when(tf_g == t_valid - 1)
        def _():
            last_ref[:, 0:hp] = hf_new

        @pl.when(tb_g == t_valid - 1)
        def _():
            last_ref[:, hp:2 * hp] = hb_new

        return hf_new, hb_new

    hf, hb = lax.fori_loop(0, tc, step, (h_scr[:, 0:hp], h_scr[:, hp:2 * hp]),
                           unroll=min(tc, 4))
    h_scr[:, 0:hp] = hf
    h_scr[:, hp:2 * hp] = hb


def _head_kernel(x_ref, w1_ref, b1_ref, w2_ref, b2_ref, w3_ref, b3_ref, out_ref):
    """fc1 (BN1 folded) -> relu -> fc2 (BN2 folded) -> relu -> fc3.  Dropout = identity."""
    h = jnp.dot(x_ref[...].astype(jnp.bfloat16), w1_ref[...],
                preferred_element_type=jnp.float32) + b1_ref[...]
    h = jnp.maximum(h, 0.0)
    h = jnp.dot(h.astype(jnp.bfloat16), w2_ref[...],
                preferred_element_type=jnp.float32) + b2_ref[...]
    h = jnp.maximum(h, 0.0)
    out_ref[...] = jnp.dot(h.astype(jnp.bfloat16), w3_ref[...],
                           preferred_element_type=jnp.float32) + b3_ref[...]


# ---------------------------------------------------------------------------
# Wrappers around pallas_call
# ---------------------------------------------------------------------------
def input_projection_l0(x2d, wf_t, wb_t, bf, bb, rows_chunk):
    n, e = x2d.shape
    g = wf_t.shape[1]
    row_in = pl.BlockSpec((rows_chunk, e), lambda i: (i, 0))
    row_out = pl.BlockSpec((rows_chunk, g), lambda i: (i, 0))
    out_sds = jax.ShapeDtypeStruct((n, g), jnp.bfloat16)
    return pl.pallas_call(
        _proj_embed_kernel,
        grid=(n // rows_chunk,),
        in_specs=[row_in, _full_spec(wf_t.shape), _full_spec(wb_t.shape),
                  _full_spec(bf.shape), _full_spec(bb.shape)],
        out_specs=(row_out, row_out),
        out_shape=(out_sds, out_sds),
        compiler_params=pltpu.CompilerParams(
            dimension_semantics=("parallel",), vmem_limit_bytes=VMEM_LIMIT),
    )(x2d, wf_t, wb_t, bf, bb)


def input_projection_hidden(xf, xb, wf, wb, bf, bb, rows_chunk):
    n, hp = xf.shape
    g = wf.shape[1]
    row_in = pl.BlockSpec((rows_chunk, hp), lambda i: (i, 0))
    row_out = pl.BlockSpec((rows_chunk, g), lambda i: (i, 0))
    out_sds = jax.ShapeDtypeStruct((n, g), jnp.bfloat16)
    return pl.pallas_call(
        _proj_hidden_kernel,
        grid=(n // rows_chunk,),
        in_specs=[row_in, row_in,
                  _full_spec(wf.shape), _full_spec(wb.shape),
                  _full_spec(bf.shape), _full_spec(bb.shape)],
        out_specs=(row_out, row_out),
        out_shape=(out_sds, out_sds),
        compiler_params=pltpu.CompilerParams(
            dimension_semantics=("parallel",), vmem_limit_bytes=VMEM_LIMIT),
    )(xf, xb, wf, wb, bf, bb)


def bigru_layer(gif, gib, whh_bd, bhh, *, hp, tc, t_valid, last_only):
    tp, bp, g = gif.shape
    nc = tp // tc
    gi_fwd_spec = pl.BlockSpec((tc, bp, g), lambda c: (c, 0, 0))
    gi_bwd_spec = pl.BlockSpec((tc, bp, g), lambda c: (nc - 1 - c, 0, 0))
    in_specs = [gi_fwd_spec, gi_bwd_spec,
                _full_spec(whh_bd.shape), _full_spec(bhh.shape)]
    scratch = [pltpu.VMEM((bp, 2 * hp), jnp.float32)]
    if last_only:
        kernel = functools.partial(_bigru_last_kernel, hp=hp, tc=tc, t_valid=t_valid)
        out_shape = jax.ShapeDtypeStruct((bp, 2 * hp), jnp.float32)
        out_specs = pl.BlockSpec((bp, 2 * hp), lambda c: (0, 0))
    else:
        kernel = functools.partial(_bigru_seq_kernel, hp=hp, tc=tc, t_valid=t_valid)
        out_shape = (jax.ShapeDtypeStruct((tp, bp, hp), jnp.bfloat16),
                     jax.ShapeDtypeStruct((tp, bp, hp), jnp.bfloat16))
        out_specs = (pl.BlockSpec((tc, bp, hp), lambda c: (c, 0, 0)),
                     pl.BlockSpec((tc, bp, hp), lambda c: (nc - 1 - c, 0, 0)))
    return pl.pallas_call(
        kernel,
        grid=(nc,),
        in_specs=in_specs,
        out_specs=out_specs,
        out_shape=out_shape,
        scratch_shapes=scratch,
        compiler_params=pltpu.CompilerParams(
            dimension_semantics=("arbitrary",), vmem_limit_bytes=VMEM_LIMIT),
    )(gif, gib, whh_bd, bhh)


def head_forward(x_last, w1_t, b1, w2_t, b2, w3_t, b3):
    bp = x_last.shape[0]
    args = (x_last, w1_t, b1, w2_t, b2, w3_t, b3)
    return pl.pallas_call(
        _head_kernel,
        out_shape=jax.ShapeDtypeStruct((bp, 1), jnp.float32),
        in_specs=[VMEM_SPEC] * len(args),
        out_specs=VMEM_SPEC,
        compiler_params=pltpu.CompilerParams(vmem_limit_bytes=VMEM_LIMIT),
    )(*args)


# ---------------------------------------------------------------------------
# Host-side weight packing (gate/lane padding, block-diag W_hh, BN folding)
# ---------------------------------------------------------------------------
def _pad_gate_rows(w, h, hp):
    """(3h, ...) -> (3hp, ...): each gate's h rows placed at the top of its hp slot."""
    out = jnp.zeros((3 * hp,) + w.shape[1:], w.dtype)
    for gate in range(3):
        out = out.at[gate * hp:gate * hp + h].set(w[gate * h:(gate + 1) * h])
    return out


def _pad_leading(x, hp):
    out = jnp.zeros((hp,) + x.shape[1:], x.dtype)
    return out.at[:x.shape[0]].set(x)


def _bf16_dot(a, b):
    return jnp.dot(a.astype(jnp.bfloat16), b.astype(jnp.bfloat16),
                   preferred_element_type=jnp.float32)


# ---------------------------------------------------------------------------
# Model (deterministic synthetic parameters, shapes mirror the PyTorch module)
# ---------------------------------------------------------------------------
class GRUModelPallas:
    def __init__(self, key, vocab_size, embed_dim, gru_hidden=32, gru_layers=2,
                 bidirectional=True, fc1_size=64, fc2_size=32, output_size=1,
                 time_chunk=32):
        assert bidirectional, "fused kernel implements the bidirectional module"
        self.gru_layers = gru_layers
        self.num_dir = 2
        self.gru_hidden = gru_hidden
        self.hp = _round_up(gru_hidden, LANE)   # per-gate, 128-lane-aligned hidden width
        self.time_chunk = time_chunk
        H = gru_hidden
        keys = iter(jax.random.split(key, 64))

        def unif(shape, scale):
            return jax.random.uniform(next(keys), shape, jnp.float32, -scale, scale)

        # frozen embedding table (non_trainable=True in the reference module)
        self.embed = jax.random.normal(next(keys), (vocab_size, embed_dim),
                                       jnp.float32) * 0.1

        k = 1.0 / np.sqrt(H)
        self.gru_params = []
        for layer in range(gru_layers):
            d_in = embed_dim if layer == 0 else H * self.num_dir
            layer_p = {}
            for direction in ("fwd", "bwd"):
                layer_p[direction] = dict(
                    w_ih=unif((3 * H, d_in), k), w_hh=unif((3 * H, H), k),
                    b_ih=unif((3 * H,), k), b_hh=unif((3 * H,), k))
            self.gru_params.append(layer_p)

        in_head = H * self.num_dir
        k1, k2, k3 = 1 / np.sqrt(in_head), 1 / np.sqrt(fc1_size), 1 / np.sqrt(fc2_size)
        self.head = dict(
            fc1_w=unif((fc1_size, in_head), k1), fc1_b=unif((fc1_size,), k1),
            bn1_g=unif((fc1_size,), 1.0) * 0.5 + 1.0, bn1_b=unif((fc1_size,), 0.5),
            bn1_m=jnp.zeros((fc1_size,), jnp.float32),
            bn1_v=jnp.ones((fc1_size,), jnp.float32),
            fc2_w=unif((fc2_size, fc1_size), k2), fc2_b=unif((fc2_size,), k2),
            bn2_g=unif((fc2_size,), 1.0) * 0.5 + 1.0, bn2_b=unif((fc2_size,), 0.5),
            bn2_m=jnp.zeros((fc2_size,), jnp.float32),
            bn2_v=jnp.ones((fc2_size,), jnp.float32),
            fc3_w=unif((output_size, fc2_size), k3), fc3_b=unif((output_size,), k3))

        self._prepare_kernel_params()

    # ---- kernel-side parameter packing -------------------------------------
    def _prepare_kernel_params(self):
        H, HP = self.gru_hidden, self.hp
        eps = 1e-5

        def gate_bias(b):
            return _pad_gate_rows(b.reshape(3 * H, 1), H, HP).reshape(1, 3 * HP)

        self.kparams = []
        for layer, lp in enumerate(self.gru_params):
            d = {}
            whh_bd = jnp.zeros((2 * HP, 6 * HP), jnp.float32)
            bhh_cat = jnp.zeros((1, 6 * HP), jnp.float32)
            for idx, (tag, dname) in enumerate((("f", "fwd"), ("b", "bwd"))):
                p = lp[dname]
                wih = _pad_gate_rows(p["w_ih"], H, HP)                 # (3HP, Din)
                if layer == 0:
                    d["wih_t_" + tag] = wih.T.astype(jnp.bfloat16)     # (E, 3HP)
                else:
                    # input = [fwd out | bwd out], each padded to HP lanes
                    ws = jnp.zeros((2 * HP, 3 * HP), jnp.float32)
                    ws = ws.at[0:H].set(wih[:, 0:H].T)
                    ws = ws.at[HP:HP + H].set(wih[:, H:2 * H].T)
                    d["wih_" + tag] = ws.astype(jnp.bfloat16)           # (2HP, 3HP)
                whh = _pad_gate_rows(p["w_hh"], H, HP)                 # (3HP, H)
                whh_t = _pad_leading(whh.T, HP)                        # (HP, 3HP)
                whh_bd = whh_bd.at[idx * HP:(idx + 1) * HP,
                                   idx * 3 * HP:(idx + 1) * 3 * HP].set(whh_t)
                bhh_cat = bhh_cat.at[:, idx * 3 * HP:(idx + 1) * 3 * HP].set(
                    gate_bias(p["b_hh"]))
                d["bih_" + tag] = gate_bias(p["b_ih"])
            d["whh_bd"] = whh_bd.astype(jnp.bfloat16)                  # block-diag (2HP, 6HP)
            d["bhh"] = bhh_cat
            self.kparams.append(d)

        hd = self.head

        def fold(w, b, g, beta, m, v):   # fold eval-mode BatchNorm into the linear layer
            s = g * lax.rsqrt(v + eps)
            return w * s[:, None], (b - m) * s + beta

        w1, b1 = fold(hd["fc1_w"], hd["fc1_b"], hd["bn1_g"], hd["bn1_b"],
                      hd["bn1_m"], hd["bn1_v"])
        w2, b2 = fold(hd["fc2_w"], hd["fc2_b"], hd["bn2_g"], hd["bn2_b"],
                      hd["bn2_m"], hd["bn2_v"])
        w1p = jnp.zeros((w1.shape[0], 2 * HP), jnp.float32)
        w1p = w1p.at[:, 0:H].set(w1[:, 0:H]).at[:, HP:HP + H].set(w1[:, H:2 * H])
        self.khead = dict(
            w1_t=w1p.T.astype(jnp.bfloat16), b1=b1[None, :],
            w2_t=w2.T.astype(jnp.bfloat16), b2=b2[None, :],
            w3_t=hd["fc3_w"].T.astype(jnp.bfloat16), b3=hd["fc3_b"][None, :])

        self.embed_bf16 = self.embed.astype(jnp.bfloat16)

    # ---- Pallas forward ------------------------------------------------------
    def forward(self, x_tokens):
        B, T = x_tokens.shape
        HP = self.hp
        Bp = _round_up(max(B, BATCH_PAD), BATCH_PAD)      # bf16-tile-aligned batch
        tc = min(self.time_chunk, T)                      # time chunk for the recurrence grid
        Tp = _round_up(T, tc)                             # padded time (masked in-kernel)
        rows_chunk = Bp * _pick_div(Tp, max(1, 512 // Bp))  # large M tiles for projections

        tok = jnp.zeros((Bp, Tp), x_tokens.dtype).at[:B, :T].set(x_tokens)
        # TODO(synk): fuse the embedding gather into the layer-0 projection kernel via
        # PrefetchScalarGridSpec scalar prefetch instead of materializing (Tp,Bp,E) in HBM.
        emb = jnp.take(self.embed_bf16, tok.T, axis=0)    # (Tp, Bp, E) time-major, bf16
        x2d = emb.reshape(Tp * Bp, -1)

        xf = xb = None
        last = None
        for layer in range(self.gru_layers):
            p = self.kparams[layer]
            if layer == 0:
                gif, gib = input_projection_l0(
                    x2d, p["wih_t_f"], p["wih_t_b"], p["bih_f"], p["bih_b"], rows_chunk)
            else:
                gif, gib = input_projection_hidden(
                    xf, xb, p["wih_f"], p["wih_b"], p["bih_f"], p["bih_b"], rows_chunk)
            gif = gif.reshape(Tp, Bp, 3 * HP)
            gib = gib.reshape(Tp, Bp, 3 * HP)
            if layer == self.gru_layers - 1:
                last = bigru_layer(gif, gib, p["whh_bd"], p["bhh"],
                                   hp=HP, tc=tc, t_valid=T, last_only=True)
            else:
                outf, outb = bigru_layer(gif, gib, p["whh_bd"], p["bhh"],
                                         hp=HP, tc=tc, t_valid=T, last_only=False)
                xf = outf.reshape(Tp * Bp, HP)
                xb = outb.reshape(Tp * Bp, HP)
            # nn.GRU inter-layer dropout(0.5): identity in eval mode.

        kh = self.khead
        logits = head_forward(last, kh["w1_t"], kh["b1"], kh["w2_t"], kh["b2"],
                              kh["w3_t"], kh["b3"])
        return logits[:B]

    # ---- pure-JAX reference (bf16-matmul reference) --------------------------
    def forward_ref(self, x_tokens):
        emb = jnp.take(self.embed, x_tokens, axis=0)
        h_seq = jnp.transpose(emb, (1, 0, 2))
        H = self.gru_hidden

        def run_dir(seq, p):
            def cell(h, x_t):
                gi = _bf16_dot(x_t, p["w_ih"].T) + p["b_ih"]
                gh = _bf16_dot(h, p["w_hh"].T) + p["b_hh"]
                r = jax.nn.sigmoid(gi[:, :H] + gh[:, :H])
                z = jax.nn.sigmoid(gi[:, H:2 * H] + gh[:, H:2 * H])
                n = jnp.tanh(gi[:, 2 * H:] + r * gh[:, 2 * H:])
                h_new = (1.0 - z) * n + z * h
                return h_new, h_new

            h0 = jnp.zeros((seq.shape[1], H), jnp.float32)
            _, out = lax.scan(cell, h0, seq)
            return out

        for layer in range(self.gru_layers):
            p = self.gru_params[layer]
            fwd = run_dir(h_seq, p["fwd"])
            bwd = jnp.flip(run_dir(jnp.flip(h_seq, 0), p["bwd"]), 0)
            h_seq = jnp.concatenate([fwd, bwd], axis=-1)
        x = h_seq[-1]
        hd = self.head
        eps = 1e-5
        x = _bf16_dot(x, hd["fc1_w"].T) + hd["fc1_b"]
        x = (x - hd["bn1_m"]) * lax.rsqrt(hd["bn1_v"] + eps) * hd["bn1_g"] + hd["bn1_b"]
        x = jnp.maximum(x, 0.0)
        x = _bf16_dot(x, hd["fc2_w"].T) + hd["fc2_b"]
        x = (x - hd["bn2_m"]) * lax.rsqrt(hd["bn2_v"] + eps) * hd["bn2_g"] + hd["bn2_b"]
        x = jnp.maximum(x, 0.0)
        return _bf16_dot(x, hd["fc3_w"].T) + hd["fc3_b"]


# ---------------------------------------------------------------------------
if __name__ == "__main__":
    key = jax.random.PRNGKey(0)
    B, T = 2, 8
    vocab_size, embed_dim = 50, 32

    # time_chunk=5 with T=8 -> Tp=10, 2 time chunks: exercises the chunked grid,
    # the cross-chunk scratch carry AND the padded-time masking / last-step capture.
    model = GRUModelPallas(key, vocab_size, embed_dim,
                           gru_hidden=32, gru_layers=2, bidirectional=True,
                           fc1_size=64, fc2_size=32, output_size=1, time_chunk=5)

    x = jax.random.randint(jax.random.fold_in(key, 999), (B, T), 0, vocab_size,
                           dtype=jnp.int32)

    out = jax.block_until_ready(model.forward(x))
    ref = jax.block_until_ready(model.forward_ref(x))

    assert out.shape == (B, 1) and out.dtype == jnp.float32
    # Tolerance covers bf16-MXU kernels + bf16 GI storage vs the bf16-matmul JAX
    # reference (BN folding, accumulation order, transcendental differences).
    np.testing.assert_allclose(np.asarray(out), np.asarray(ref), rtol=2e-2, atol=2e-2)
    print("KERNEL_OK")
</pallas_src>

<mosaic_0001>
module attributes {stable_mosaic.version = 11 : i64} {
  func.func @_proj_embed_kernel(%arg0: i32, %arg1: memref<160x32xbf16, #tpu.memory_space<vmem>>, %arg2: memref<32x384xbf16, #tpu.memory_space<vmem>>, %arg3: memref<32x384xbf16, #tpu.memory_space<vmem>>, %arg4: memref<1x384xf32, #tpu.memory_space<vmem>>, %arg5: memref<1x384xf32, #tpu.memory_space<vmem>>, %arg6: memref<160x384xbf16, #tpu.memory_space<vmem>>, %arg7: memref<160x384xbf16, #tpu.memory_space<vmem>>) attributes {dimension_semantics = [#tpu.dimension_semantics<parallel>], iteration_bounds = array<i64: 1>, scalar_prefetch = 0 : i64, scratch_operands = 0 : i64, tpu.core_type = #tpu.core_type<tc>, window_params = [{transform_indices = @transform_0, window_bounds = array<i64: 160, 32>}, {pipeline_mode = #tpu.pipeline_mode<synchronous>, transform_indices = @transform_1, window_bounds = array<i64: 32, 384>}, {pipeline_mode = #tpu.pipeline_mode<synchronous>, transform_indices = @transform_2, window_bounds = array<i64: 32, 384>}, {pipeline_mode = #tpu.pipeline_mode<synchronous>, transform_indices = @transform_3, window_bounds = array<i64: 1, 384>}, {pipeline_mode = #tpu.pipeline_mode<synchronous>, transform_indices = @transform_4, window_bounds = array<i64: 1, 384>}, {transform_indices = @transform_5, window_bounds = array<i64: 160, 384>}, {transform_indices = @transform_6, window_bounds = array<i64: 160, 384>}]} {
    %c0 = arith.constant 0 : index
    %c0_0 = arith.constant 0 : index
    %0 = vector.load %arg1[%c0, %c0_0] : memref<160x32xbf16, #tpu.memory_space<vmem>>, vector<160x32xbf16>
    %c0_1 = arith.constant 0 : index
    %c0_2 = arith.constant 0 : index
    %1 = vector.load %arg2[%c0_1, %c0_2] : memref<32x384xbf16, #tpu.memory_space<vmem>>, vector<32x384xbf16>
    %cst = arith.constant dense<0.000000e+00> : vector<160x384xf32>
    %2 = tpu.matmul %0, %1, %cst {dimension_numbers = #tpu.dot_dimension_numbers<[1], [0], [0], [1], [0, 0, 1, 1], [], []>} : vector<160x32xbf16>, vector<32x384xbf16>, vector<160x384xf32> -> vector<160x384xf32>
    %c0_3 = arith.constant 0 : index
    %c0_4 = arith.constant 0 : index
    %3 = vector.load %arg4[%c0_3, %c0_4] : memref<1x384xf32, #tpu.memory_space<vmem>>, vector<1x384xf32>
    %4 = vector.broadcast %3 : vector<1x384xf32> to vector<160x384xf32>
    %5 = arith.addf %2, %4 : vector<160x384xf32>
    %6 = arith.truncf %5 : vector<160x384xf32> to vector<160x384xbf16>
    %c0_5 = arith.constant 0 : index
    %c0_6 = arith.constant 0 : index
    %7 = vector.load %arg6[%c0_5, %c0_6] : memref<160x384xbf16, #tpu.memory_space<vmem>>, vector<160x384xbf16>
    tpu.vector_store %arg6[%c0_5, %c0_6], %6 {strides = array<i32>} : memref<160x384xbf16, #tpu.memory_space<vmem>>, vector<160x384xbf16>,
    %c0_7 = arith.constant 0 : index
    %c0_8 = arith.constant 0 : index
    %8 = vector.load %arg3[%c0_7, %c0_8] : memref<32x384xbf16, #tpu.memory_space<vmem>>, vector<32x384xbf16>
    %cst_9 = arith.constant dense<0.000000e+00> : vector<160x384xf32>
    %9 = tpu.matmul %0, %8, %cst_9 {dimension_numbers = #tpu.dot_dimension_numbers<[1], [0], [0], [1], [0, 0, 1, 1], [], []>} : vector<160x32xbf16>, vector<32x384xbf16>, vector<160x384xf32> -> vector<160x384xf32>
    %c0_10 = arith.constant 0 : index
    %c0_11 = arith.constant 0 : index
    %10 = vector.load %arg5[%c0_10, %c0_11] : memref<1x384xf32, #tpu.memory_space<vmem>>, vector<1x384xf32>
    %11 = vector.broadcast %10 : vector<1x384xf32> to vector<160x384xf32>
    %12 = arith.addf %9, %11 : vector<160x384xf32>
    %13 = arith.truncf %12 : vector<160x384xf32> to vector<160x384xbf16>
    %c0_12 = arith.constant 0 : index
    %c0_13 = arith.constant 0 : index
    %14 = vector.load %arg7[%c0_12, %c0_13] : memref<160x384xbf16, #tpu.memory_space<vmem>>, vector<160x384xbf16>
    tpu.vector_store %arg7[%c0_12, %c0_13], %13 {strides = array<i32>} : memref<160x384xbf16, #tpu.memory_space<vmem>>, vector<160x384xbf16>,
    return
  }
  func.func @transform_0(%arg0: i32) -> (i32, i32) {
    %c0_i32 = arith.constant 0 : i32
    %c0_i32_0 = arith.constant 0 : i32
    return %arg0, %c0_i32 : i32, i32
  }
  func.func @transform_1(%arg0: i32) -> (i32, i32) {
    %c0_i32 = arith.constant 0 : i32
    %c0_i32_0 = arith.constant 0 : i32
    %c0_i32_1 = arith.constant 0 : i32
    return %c0_i32, %c0_i32_0 : i32, i32
  }
  func.func @transform_2(%arg0: i32) -> (i32, i32) {
    %c0_i32 = arith.constant 0 : i32
    %c0_i32_0 = arith.constant 0 : i32
    %c0_i32_1 = arith.constant 0 : i32
    return %c0_i32, %c0_i32_0 : i32, i32
  }
  func.func @transform_3(%arg0: i32) -> (i32, i32) {
    %c0_i32 = arith.constant 0 : i32
    %c0_i32_0 = arith.constant 0 : i32
    %c0_i32_1 = arith.constant 0 : i32
    return %c0_i32, %c0_i32_0 : i32, i32
  }
  func.func @transform_4(%arg0: i32) -> (i32, i32) {
    %c0_i32 = arith.constant 0 : i32
    %c0_i32_0 = arith.constant 0 : i32
    %c0_i32_1 = arith.constant 0 : i32
    return %c0_i32, %c0_i32_0 : i32, i32
  }
  func.func @transform_5(%arg0: i32) -> (i32, i32) {
    %c0_i32 = arith.constant 0 : i32
    %c0_i32_0 = arith.constant 0 : i32
    return %arg0, %c0_i32 : i32, i32
  }
  func.func @transform_6(%arg0: i32) -> (i32, i32) {
    %c0_i32 = arith.constant 0 : i32
    %c0_i32_0 = arith.constant 0 : i32
    return %arg0, %c0_i32 : i32, i32
  }
}

</mosaic_0001>

<bundles_post_ra>
// kernel: tpu_custom_call.1
= control target key start
LH: loop header
LB: loop body
LE: loop exit
PB: predicated region body
PF: predicated region fallthrough
CT: control target
= control target key end

     0   :  { %12 = vsyncpa [#allocation3], 0  ;;  %v1617_v2 = vmov 0   ;;  %vm152_vm0 = vcmask 261120   ;;  %s1992_s0 = inlined_call_operand.vmem [shape: bf16[160,32], index: 0, kind: input, shape index: {}]   ;;  %s1993_s1 = inlined_call_operand.vmem [shape: bf16[32,384], index: 1, kind: input, shape index: {}]   ;;  %s1994_s2 = inlined_call_operand.vmem [shape: bf16[32,384], index: 2, kind: input, shape index: {}]   ;;  %s1995_s3 = inlined_call_operand.vmem [shape: f32[1,384], index: 3, kind: input, shape index: {}]   ;;  %s1996_s4 = inlined_call_operand.vmem [shape: f32[1,384], index: 4, kind: input, shape index: {}]   ;;  %s1997_s5 = inlined_call_operand.hbm [shape: bf16[160,384], index: 5, kind: output, shape index: {0}]   ;;  %s1998_s6 = inlined_call_operand.hbm [shape: bf16[160,384], index: 6, kind: output, shape index: {1}]  }
   0x1   :  { %v1543_v0 = vld [vmem:[%s1993_s1 + $0x4] ss:$12 sps:$4 sm:$0xff]   ;;  %v1545_v1 = vld [vmem:[%s1993_s1 + $0x8] ss:$12 sps:$4 sm:$0xff]   ;;  %215 = vmatprep.mubr.bf16.mxu0 %v1617_v2  ;;  %v1546_v3 = vld [vmem:[%s1993_s1] ss:$12 sps:$4 sm:$0xff]  }
   0x2   :  { %183 = vmatprep.subr.bf16.mxu0 %v1543_v0  ;;  %1490 = vmatprep.subr.bf16.mxu1 %v1545_v1  ;;  %v1547_v4 = vld [vmem:[%s1993_s1 + $0x1c] ss:$12 sps:$4 sm:$0xff]   ;;  %v1549_v5 = vld [vmem:[%s1993_s1 + $0x20] ss:$12 sps:$4 sm:$0xff]   ;;  %v1550_v6 = vld [vmem:[%s1993_s1 + $0x18] ss:$12 sps:$4 sm:$0xff]  }
   0x3   :  { %184 = vmatpush1.bf16.msra.mxu0 %v1546_v3  ;;  %1491 = vmatpush3.bf16.msra.mxu1 %v1545_v1  ;;  %v1679_v7 = vld [vmem:[%s1992_s0] sm:$0xff]   ;;  %v1684_v8 = vld [vmem:[%s1992_s0 + $0x8] sm:$0xff]   ;;  %v1557_v12 = vld [vmem:[%s1992_s0 + $0x10] sm:$0xff]  }
   0x4   :  { %185 = vmatprep.subr.bf16.mxu0 %v1547_v4  ;;  %1492 = vmatprep.subr.bf16.mxu1 %v1549_v5  ;;  %v1553_v9 = vld [vmem:[%s1994_s2] ss:$12 sps:$4 sm:$0xff]   ;;  %v1555_v10 = vld [vmem:[%s1994_s2 + $0x4] ss:$12 sps:$4 sm:$0xff]   ;;  %v1556_v11 = vld [vmem:[%s1994_s2 + $0x8] ss:$12 sps:$4 sm:$0xff]  }
   0x5   :  { %1494 = vmatprep.mubr.msk.bf16.mxu1 %vm152_vm0, %v1679_v7  ;;  %v1561_v13 = vld [vmem:[%s1994_s2 + $0x18] ss:$12 sps:$4 sm:$0xff]   ;;  %v1563_v14 = vld [vmem:[%s1994_s2 + $0x1c] ss:$12 sps:$4 sm:$0xff]   ;;  %v1568_v17 = vld [vmem:[%s1994_s2 + $0x20] ss:$12 sps:$4 sm:$0xff]  }
   0x6   :  { %v1558_v15 = vld [vmem:[%s1992_s0 + $0x18] sm:$0xff]   ;;  %v1559_v16 = vld [vmem:[%s1992_s0 + $0x20] sm:$0xff]  }
   0x7   :  { %186 = vmatpush1.bf16.msra.mxu0 %v1550_v6  ;;  %1493 = vmatpush3.bf16.msra.mxu1 %v1549_v5 }
   0x8   :  { %726 = vmatprep.subr.bf16.mxu1 %v1555_v10  ;;  %1514 = vmatprep.subr.bf16.mxu0 %v1556_v11 }
   0xa   :  { %1260 = vmatmul.mubr.msk.bf16.vlgmr.msra.gmra.mrb[0].mxu0 %vm152_vm0, %v1679_v7  ;;  %1495 = vmatmul.mubr.msk.bf16.vlgmr.msra.gmra.mrb[0].mxu1 %vm152_vm0, %v1684_v8 }
   0xb   :  { %727 = vmatpush1.bf16.msra.mxu1 %v1553_v9  ;;  %1515 = vmatpush3.bf16.msra.mxu0 %v1556_v11 }
   0xc   :  { %225 = vmatprep.mubr.bf16.mxu0 %v1617_v2  ;;  %1498 = vmatprep.mubr.msk.bf16.mxu1 %vm152_vm0, %v1557_v12 }
   0xd   :  { %728 = vmatprep.subr.bf16.mxu1 %v1563_v14 }
   0xf   :  { %729 = vmatpush1.bf16.msra.mxu1 %v1561_v13 }
  0x12   :  { %1261 = vmatmul.mubr.msk.bf16.gmra.mrb[4].mxu0 %vm152_vm0, %v1684_v8  ;;  %1499 = vmatmul.mubr.msk.bf16.gmra.mrb[4].mxu1 %vm152_vm0, %v1558_v15 }
  0x13   :  { %13 = vsyncpa [#allocation5], 0  ;;  %235 = vmatprep.mubr.bf16.mxu0 %v1617_v2  ;;  %1502 = vmatprep.mubr.msk.bf16.mxu1 %vm152_vm0, %v1559_v16  ;;  %v1560_v18 = vld [vmem:[%s1992_s0 + $0x28] sm:$0xff]   ;;  %v1564_v19 = vld [vmem:[%s1992_s0 + $0x30] sm:$0xff]   ;;  %v55_v23 = vlaneseq }
  0x14   :  { %1516 = vmatprep.subr.bf16.mxu0 %v1568_v17  ;;  %v1565_v20 = vld [vmem:[%s1992_s0 + $0x38] sm:$0xff]   ;;  %v1566_v21 = vld [vmem:[%s1992_s0 + $0x40] sm:$0xff]   ;;  %v1567_v22 = vld [vmem:[%s1992_s0 + $0x48] sm:$0xff]  }
  0x15   :  { %1517 = vmatpush3.bf16.msra.mxu0 %v1568_v17  ;;  %v1795_v24 = vshrl.u32 %v55_v23, 7  ;;  %v53_v27 = vld [vmem:[%s1995_s3] sm:$0x7] }
  0x17   :  { %v57_v25 = vsub.s32 0, %v1795_v24  ;;  %v65_v26 = vsub.s32 2, %v1795_v24  ;;  %v61_v28 = vsub.s32 1, %v1795_v24 }
  0x19   :  { %v1805_v29 = vrot.slane %v53_v27, %v57_v25  ;;  %v1809_v30 = vrot.slane %v53_v27, %v65_v26  ;;  %v1813_v31 = vrot.slane %v53_v27, %v61_v28 }
  0x1a   :  { %1262 = vmatmul.mubr.msk.bf16.gmra.mrb[8].mxu0 %vm152_vm0, %v1557_v12  ;;  %1503 = vmatmul.mubr.msk.bf16.gmra.mrb[8].mxu1 %vm152_vm0, %v1560_v18 }
  0x1b   :  { %245 = vmatprep.mubr.bf16.mxu0 %v1617_v2  ;;  %1506 = vmatprep.mubr.msk.bf16.mxu1 %vm152_vm0, %v1564_v19 }
  0x22   :  { %1263 = vmatmul.mubr.msk.bf16.gmra.mrb[12].mxu0 %vm152_vm0, %v1558_v15  ;;  %1507 = vmatmul.mubr.msk.bf16.gmra.mrb[12].mxu1 %vm152_vm0, %v1565_v20 }
  0x23   :  { %255 = vmatprep.mubr.bf16.mxu0 %v1617_v2  ;;  %1510 = vmatprep.mubr.msk.bf16.mxu1 %vm152_vm0, %v1566_v21 }
  0x2a   :  { %1264 = vmatmul.mubr.msk.bf16.gmra.mrb[16].mxu0 %vm152_vm0, %v1559_v16  ;;  %1511 = vmatmul.mubr.msk.bf16.gmra.mrb[16].mxu1 %vm152_vm0, %v1567_v22 }
  0x2b   :  { %265 = vmatprep.mubr.bf16.mxu0 %v1617_v2  ;;  %758 = vmatprep.mubr.bf16.mxu1 %v1617_v2 }
  0x32   :  { %1265 = vmatmul.mubr.msk.bf16.gmra.mrb[20].mxu0 %vm152_vm0, %v1560_v18  ;;  %1326 = vmatmul.mubr.msk.bf16.vlgmr.msra.gmra.mrb[20].mxu1 %vm152_vm0, %v1679_v7 }
  0x33   :  { %275 = vmatprep.mubr.bf16.mxu0 %v1617_v2  ;;  %768 = vmatprep.mubr.bf16.mxu1 %v1617_v2 }
  0x3a   :  { %1266 = vmatmul.mubr.msk.bf16.gmra.mrb[24].mxu0 %vm152_vm0, %v1564_v19  ;;  %1327 = vmatmul.mubr.msk.bf16.gmra.mrb[24].mxu1 %vm152_vm0, %v1684_v8 }
  0x3b   :  { %285 = vmatprep.mubr.bf16.mxu0 %v1617_v2  ;;  %778 = vmatprep.mubr.bf16.mxu1 %v1617_v2 }
  0x42   :  { %1267 = vmatmul.mubr.msk.bf16.gmra.mrb[28].mxu0 %vm152_vm0, %v1565_v20  ;;  %1328 = vmatmul.mubr.msk.bf16.gmra.mrb[28].mxu1 %vm152_vm0, %v1557_v12 }
  0x43   :  { %295 = vmatprep.mubr.bf16.mxu0 %v1617_v2  ;;  %788 = vmatprep.mubr.bf16.mxu1 %v1617_v2 }
  0x4a   :  { %1268 = vmatmul.mubr.msk.bf16.gmra.mrb[32].mxu0 %vm152_vm0, %v1566_v21  ;;  %1329 = vmatmul.mubr.msk.bf16.gmra.mrb[32].mxu1 %vm152_vm0, %v1558_v15 }
  0x4b   :  { %305 = vmatprep.mubr.bf16.mxu0 %v1617_v2  ;;  %798 = vmatprep.mubr.bf16.mxu1 %v1617_v2 }
  0x52   :  { %1269 = vmatmul.mubr.msk.bf16.gmra.mrb[36].mxu0 %vm152_vm0, %v1567_v22  ;;  %1330 = vmatmul.mubr.msk.bf16.gmra.mrb[36].mxu1 %vm152_vm0, %v1559_v16 }
  0x53   :  { %808 = vmatprep.mubr.bf16.mxu1 %v1617_v2  ;;  %1518 = vmatprep.mubr.msk.bf16.mxu0 %vm152_vm0, %v1679_v7 }
  0x5a   :  { %1331 = vmatmul.mubr.msk.bf16.gmra.mrb[40].mxu1 %vm152_vm0, %v1560_v18  ;;  %1519 = vmatmul.mubr.msk.bf16.vlgmr.msra.gmra.mrb[40].mxu0 %vm152_vm0, %v1684_v8 }
  0x5b   :  { %818 = vmatprep.mubr.bf16.mxu1 %v1617_v2  ;;  %1522 = vmatprep.mubr.msk.bf16.mxu0 %vm152_vm0, %v1557_v12 }
  0x62   :  { %1332 = vmatmul.mubr.msk.bf16.gmra.mrb[44].mxu1 %vm152_vm0, %v1564_v19  ;;  %1523 = vmatmul.mubr.msk.bf16.gmra.mrb[44].mxu0 %vm152_vm0, %v1558_v15 }
  0x63   :  { %828 = vmatprep.mubr.bf16.mxu1 %v1617_v2  ;;  %1526 = vmatprep.mubr.msk.bf16.mxu0 %vm152_vm0, %v1559_v16 }
  0x6a   :  { %1333 = vmatmul.mubr.msk.bf16.gmra.mrb[48].mxu1 %vm152_vm0, %v1565_v20  ;;  %1527 = vmatmul.mubr.msk.bf16.gmra.mrb[48].mxu0 %vm152_vm0, %v1560_v18 }
  0x6b   :  { %838 = vmatprep.mubr.bf16.mxu1 %v1617_v2  ;;  %1530 = vmatprep.mubr.msk.bf16.mxu0 %vm152_vm0, %v1564_v19 }
  0x72   :  { %1334 = vmatmul.mubr.msk.bf16.gmra.mrb[52].mxu1 %vm152_vm0, %v1566_v21  ;;  %1531 = vmatmul.mubr.msk.bf16.gmra.mrb[52].mxu0 %vm152_vm0, %v1565_v20 }
  0x73   :  { %848 = vmatprep.mubr.bf16.mxu1 %v1617_v2  ;;  %1534 = vmatprep.mubr.msk.bf16.mxu0 %vm152_vm0, %v1566_v21 }
  0x7a   :  { %1335 = vmatmul.mubr.msk.bf16.gmra.mrb[56].mxu1 %vm152_vm0, %v1567_v22  ;;  %1535 = vmatmul.mubr.msk.bf16.gmra.mrb[56].mxu0 %vm152_vm0, %v1567_v22 }
  0xdd   :  { %v217_v32 = vpop.f32.mrb[0].mxu0  ;;  %v1496_v33 = vpop.f32.mrb[0].mxu1 }
  0xde   :  { %v218_v34 = vadd.f32 %v217_v32, %v1805_v29  ;;  %v359_v35 = vadd.f32 %v1496_v33, %v1809_v30  ;;  %v219_v36 = vpop.f32.mrb[1].mxu0  ;;  %v350_v37 = vpop.f32.mrb[1].mxu1 }
  0xdf   :  { %v220_v38 = vadd.f32 %v219_v36, %v1813_v31  ;;  %v351_v39 = vadd.f32 %v350_v37, %v1809_v30  ;;  %v221_v40 = vpop.f32.mrb[2].mxu0  ;;  %v1497_v41 = vpop.f32.mrb[2].mxu1 }
  0xe0   :  { %v1391_v42 = vpack.c.bf16 %v359_v35, %v359_v35  ;;  %v222_v43 = vadd.f32 %v221_v40, %v1805_v29  ;;  %v362_v44 = vadd.f32 %v1497_v41, %v1809_v30  ;;  %v223_v45 = vpop.f32.mrb[3].mxu0  ;;  %v353_v46 = vpop.f32.mrb[3].mxu1 }
  0xe1   :  { %v1386_v47 = vpack.c.bf16 %v220_v38, %v218_v34  ;;  %v1387_v48 = vpack.c.bf16 %v351_v39, %v351_v39  ;;  %v224_v49 = vadd.f32 %v223_v45, %v1813_v31  ;;  %v354_v50 = vadd.f32 %v353_v46, %v1809_v30 }
  0xe2   :  { %634 = vst [vmem:[#allocation2 + $0x20] sm:$0xf] %v1391_v42  ;;  %v1393_v51 = vpack.c.bf16 %v362_v44, %v362_v44 }
  0xe3   :  { %629 = vst [vmem:[#allocation2] sm:$0xff] %v1386_v47  ;;  %630 = vst [vmem:[#allocation2 + $0x8] sm:$0xf] %v1387_v48  ;;  %v1388_v52 = vpack.c.bf16 %v224_v49, %v222_v43  ;;  %v1389_v53 = vpack.c.bf16 %v354_v50, %v354_v50 }
  0xe4   :  { %636 = vst [vmem:[#allocation2 + $0x2c] sm:$0xf] %v1393_v51 }
  0xe5   :  { %631 = vst [vmem:[#allocation2 + $0xc] sm:$0xff] %v1388_v52  ;;  %632 = vst [vmem:[#allocation2 + $0x14] sm:$0xf] %v1389_v53  ;;  %v227_v54 = vpop.f32.mrb[4].mxu0  ;;  %v1500_v55 = vpop.f32.mrb[4].mxu1 }
  0xe6   :  { %v228_v56 = vadd.f32 %v227_v54, %v1805_v29  ;;  %v375_v57 = vadd.f32 %v1500_v55, %v1809_v30  ;;  %v229_v58 = vpop.f32.mrb[5].mxu0  ;;  %v366_v59 = vpop.f32.mrb[5].mxu1 }
  0xe7   :  { %v230_v60 = vadd.f32 %v229_v58, %v1813_v31  ;;  %v367_v61 = vadd.f32 %v366_v59, %v1809_v30  ;;  %v231_v62 = vpop.f32.mrb[6].mxu0  ;;  %v1501_v63 = vpop.f32.mrb[6].mxu1 }
  0xe8   :  { %v1399_v0 = vpack.c.bf16 %v375_v57, %v375_v57  ;;  %v232_v1 = vadd.f32 %v231_v62, %v1805_v29  ;;  %v378_v2 = vadd.f32 %v1501_v63, %v1809_v30  ;;  %v233_v3 = vpop.f32.mrb[7].mxu0  ;;  %v369_v4 = vpop.f32.mrb[7].mxu1 }
  0xe9   :  { %v1390_v5 = vpack.c.bf16 %v230_v60, %v228_v56  ;;  %v1395_v6 = vpack.c.bf16 %v367_v61, %v367_v61  ;;  %v234_v7 = vadd.f32 %v233_v3, %v1813_v31  ;;  %v370_v8 = vadd.f32 %v369_v4, %v1809_v30 }
  0xea   :  { %642 = vst [vmem:[#allocation2 + $0x50] sm:$0xf] %v1399_v0  ;;  %v1401_v9 = vpack.c.bf16 %v378_v2, %v378_v2 }
  0xeb   :  { %633 = vst [vmem:[#allocation2 + $0x18] sm:$0xff] %v1390_v5  ;;  %638 = vst [vmem:[#allocation2 + $0x38] sm:$0xf] %v1395_v6  ;;  %v1392_v10 = vpack.c.bf16 %v234_v7, %v232_v1  ;;  %v1397_v11 = vpack.c.bf16 %v370_v8, %v370_v8 }
  0xec   :  { %644 = vst [vmem:[#allocation2 + $0x5c] sm:$0xf] %v1401_v9  ;;  %v1854_v9 = vld [vmem:[%s1996_s4] sm:$0x7]  ;;  %s1618_s4 = smov [#allocation2]  }
  0xed   :  { %635 = vst [vmem:[#allocation2 + $0x24] sm:$0xff] %v1392_v10  ;;  %640 = vst [vmem:[#allocation2 + $0x44] sm:$0xf] %v1397_v11  ;;  %v237_v12 = vpop.f32.mrb[8].mxu0  ;;  %v1504_v13 = vpop.f32.mrb[8].mxu1  ;;  %s1217_s16 = sshll.u32 %s1618_s4, 4  ;;  %s1915_s16 = int_to_ptr.vmem [resolvable:$true] %s1217_s16 }
  0xee   :  { %v238_v14 = vadd.f32 %v237_v12, %v1805_v29  ;;  %v391_v15 = vadd.f32 %v1504_v13, %v1809_v30  ;;  %v239_v16 = vpop.f32.mrb[9].mxu0  ;;  %v382_v17 = vpop.f32.mrb[9].mxu1  ;;  %s1569_s17 = scalar_lea.vmem %s1915_s16, 3840  ;;  %p1574_p1 = scmp.lt.s32.totalorder %s1915_s16, %s1915_s16 }
  0xef   :  { %v240_v18 = vadd.f32 %v239_v16, %v1813_v31  ;;  %v383_v19 = vadd.f32 %v382_v17, %v1809_v30  ;;  %v241_v20 = vpop.f32.mrb[10].mxu0  ;;  %v1505_v21 = vpop.f32.mrb[10].mxu1  ;;  %p1570_p0 = scmp.ne.s32.totalorder %s1915_s16, %s1569_s17  ;;  %p1575_p2 = scmp.lt.s32.totalorder %s1569_s17, %s1569_s17 }
  0xf0   :  { %v1407_v22 = vpack.c.bf16 %v391_v15, %v391_v15  ;;  %v242_v23 = vadd.f32 %v241_v20, %v1805_v29  ;;  %v394_v27 = vadd.f32 %v1505_v21, %v1809_v30  ;;  %v243_v32 = vpop.f32.mrb[11].mxu0  ;;  %v385_v33 = vpop.f32.mrb[11].mxu1  ;;  %v1863_v20 = vrot.slane %v1854_v9, %v57_v25 }
  0xf1   :  { %v1394_v34 = vpack.c.bf16 %v240_v18, %v238_v14  ;;  %v1403_v35 = vpack.c.bf16 %v383_v19, %v383_v19  ;;  %v244_v36 = vadd.f32 %v243_v32, %v1813_v31  ;;  %v386_v37 = vadd.f32 %v385_v33, %v1809_v30  ;;  %p1576_p3 = por %p1575_p2, %p1574_p1 }
  0xf2   :  { %650 = vst [vmem:[#allocation2 + $0x80] sm:$0xf] %v1407_v22  ;;  %v1409_v38 = vpack.c.bf16 %v394_v27, %v394_v27 }
  0xf3   :  { %637 = vst [vmem:[#allocation2 + $0x30] sm:$0xff] %v1394_v34  ;;  %646 = vst [vmem:[#allocation2 + $0x68] sm:$0xf] %v1403_v35  ;;  %v1396_v39 = vpack.c.bf16 %v244_v36, %v242_v23  ;;  %v1405_v40 = vpack.c.bf16 %v386_v37, %v386_v37  ;;  %v1868_v23 = vrot.slane %v1854_v9, %v61_v28  ;;  %p1577_p4 = pnand %p1576_p3, %p1570_p0 }
  0xf4   :  { %652 = vst [vmem:[#allocation2 + $0x8c] sm:$0xf] %v1409_v38 }
  0xf5   :  { %639 = vst [vmem:[#allocation2 + $0x3c] sm:$0xff] %v1396_v39  ;;  %648 = vst [vmem:[#allocation2 + $0x74] sm:$0xf] %v1405_v40  ;;  %v247_v41 = vpop.f32.mrb[12].mxu0  ;;  %v1508_v42 = vpop.f32.mrb[12].mxu1 }
  0xf6   :  { %v248_v43 = vadd.f32 %v247_v41, %v1805_v29  ;;  %v407_v44 = vadd.f32 %v1508_v42, %v1809_v30  ;;  %v249_v45 = vpop.f32.mrb[13].mxu0  ;;  %v398_v46 = vpop.f32.mrb[13].mxu1 }
  0xf7   :  { %v250_v47 = vadd.f32 %v249_v45, %v1813_v31  ;;  %v399_v48 = vadd.f32 %v398_v46, %v1809_v30  ;;  %v251_v49 = vpop.f32.mrb[14].mxu0  ;;  %v1509_v50 = vpop.f32.mrb[14].mxu1 }
  0xf8   :  { %v1415_v51 = vpack.c.bf16 %v407_v44, %v407_v44  ;;  %v252_v52 = vadd.f32 %v251_v49, %v1805_v29  ;;  %v410_v53 = vadd.f32 %v1509_v50, %v1809_v30  ;;  %v253_v54 = vpop.f32.mrb[15].mxu0  ;;  %v401_v55 = vpop.f32.mrb[15].mxu1 }
  0xf9   :  { %v1398_v56 = vpack.c.bf16 %v250_v47, %v248_v43  ;;  %v1411_v57 = vpack.c.bf16 %v399_v48, %v399_v48  ;;  %v254_v58 = vadd.f32 %v253_v54, %v1813_v31  ;;  %v402_v59 = vadd.f32 %v401_v55, %v1809_v30 }
  0xfa   :  { %658 = vst [vmem:[#allocation2 + $0xb0] sm:$0xf] %v1415_v51  ;;  %v1417_v60 = vpack.c.bf16 %v410_v53, %v410_v53 }
  0xfb   :  { %641 = vst [vmem:[#allocation2 + $0x48] sm:$0xff] %v1398_v56  ;;  %654 = vst [vmem:[#allocation2 + $0x98] sm:$0xf] %v1411_v57  ;;  %v1400_v61 = vpack.c.bf16 %v254_v58, %v252_v52  ;;  %v1413_v62 = vpack.c.bf16 %v402_v59, %v402_v59 }
  0xfc   :  { %660 = vst [vmem:[#allocation2 + $0xbc] sm:$0xf] %v1417_v60 }
  0xfd   :  { %643 = vst [vmem:[#allocation2 + $0x54] sm:$0xff] %v1400_v61  ;;  %656 = vst [vmem:[#allocation2 + $0xa4] sm:$0xf] %v1413_v62  ;;  %v257_v63 = vpop.f32.mrb[16].mxu0  ;;  %v1512_v0 = vpop.f32.mrb[16].mxu1 }
  0xfe   :  { %v258_v1 = vadd.f32 %v257_v63, %v1805_v29  ;;  %v423_v2 = vadd.f32 %v1512_v0, %v1809_v30  ;;  %v259_v3 = vpop.f32.mrb[17].mxu0  ;;  %v414_v4 = vpop.f32.mrb[17].mxu1 }
  0xff   :  { %v260_v5 = vadd.f32 %v259_v3, %v1813_v31  ;;  %v415_v6 = vadd.f32 %v414_v4, %v1809_v30  ;;  %v261_v7 = vpop.f32.mrb[18].mxu0  ;;  %v1513_v8 = vpop.f32.mrb[18].mxu1 }
 0x100   :  { %v1423_v10 = vpack.c.bf16 %v423_v2, %v423_v2  ;;  %v262_v11 = vadd.f32 %v261_v7, %v1805_v29  ;;  %v426_v12 = vadd.f32 %v1513_v8, %v1809_v30  ;;  %v263_v13 = vpop.f32.mrb[19].mxu0  ;;  %v417_v14 = vpop.f32.mrb[19].mxu1 }
 0x101   :  { %v1402_v15 = vpack.c.bf16 %v260_v5, %v258_v1  ;;  %v1419_v16 = vpack.c.bf16 %v415_v6, %v415_v6  ;;  %v264_v17 = vadd.f32 %v263_v13, %v1813_v31  ;;  %v418_v18 = vadd.f32 %v417_v14, %v1809_v30 }
 0x102   :  { %666 = vst [vmem:[#allocation2 + $0xe0] sm:$0xf] %v1423_v10  ;;  %v1425_v19 = vpack.c.bf16 %v426_v12, %v426_v12 }
 0x103   :  { %645 = vst [vmem:[#allocation2 + $0x60] sm:$0xff] %v1402_v15  ;;  %662 = vst [vmem:[#allocation2 + $0xc8] sm:$0xf] %v1419_v16  ;;  %v1404_v21 = vpack.c.bf16 %v264_v17, %v262_v11  ;;  %v1421_v22 = vpack.c.bf16 %v418_v18, %v418_v18 }
 0x104   :  { %668 = vst [vmem:[#allocation2 + $0xec] sm:$0xf] %v1425_v19 }
 0x105   :  { %647 = vst [vmem:[#allocation2 + $0x6c] sm:$0xff] %v1404_v21  ;;  %664 = vst [vmem:[#allocation2 + $0xd4] sm:$0xf] %v1421_v22  ;;  %v267_v30 = vpop.f32.mrb[20].mxu0  ;;  %v760_v27 = vpop.f32.mrb[20].mxu1 }
 0x106   :  { %v268_v32 = vadd.f32 %v267_v30, %v1805_v29  ;;  %v761_v33 = vadd.f32 %v760_v27, %v1863_v20  ;;  %v269_v25 = vpop.f32.mrb[21].mxu0  ;;  %v762_v34 = vpop.f32.mrb[21].mxu1 }
 0x107   :  { %v270_v35 = vadd.f32 %v269_v25, %v1813_v31  ;;  %v763_v36 = vadd.f32 %v762_v34, %v1868_v23  ;;  %v271_v37 = vpop.f32.mrb[22].mxu0  ;;  %v764_v38 = vpop.f32.mrb[22].mxu1 }
 0x108   :  { %v272_v28 = vadd.f32 %v271_v37, %v1805_v29  ;;  %v765_v39 = vadd.f32 %v764_v38, %v1863_v20  ;;  %v273_v40 = vpop.f32.mrb[23].mxu0  ;;  %v766_v41 = vpop.f32.mrb[23].mxu1 }
 0x109   :  { %v1406_v42 = vpack.c.bf16 %v270_v35, %v268_v32  ;;  %v1426_v43 = vpack.c.bf16 %v763_v36, %v761_v33  ;;  %v274_v44 = vadd.f32 %v273_v40, %v1813_v31  ;;  %v767_v45 = vadd.f32 %v766_v41, %v1868_v23 }
 0x10b   :  { %649 = vst [vmem:[#allocation2 + $0x78] sm:$0xff] %v1406_v42  ;;  %1172 = vst [vmem:[#allocation4] sm:$0xff] %v1426_v43  ;;  %v1408_v46 = vpack.c.bf16 %v274_v44, %v272_v28  ;;  %v1428_v47 = vpack.c.bf16 %v767_v45, %v765_v39 }
 0x10d   :  { %651 = vst [vmem:[#allocation2 + $0x84] sm:$0xff] %v1408_v46  ;;  %1174 = vst [vmem:[#allocation4 + $0xc] sm:$0xff] %v1428_v47  ;;  %v277_v48 = vpop.f32.mrb[24].mxu0  ;;  %v770_v49 = vpop.f32.mrb[24].mxu1 }
 0x10e   :  { %v278_v50 = vadd.f32 %v277_v48, %v1805_v29  ;;  %v771_v51 = vadd.f32 %v770_v49, %v1863_v20  ;;  %v279_v52 = vpop.f32.mrb[25].mxu0  ;;  %v772_v53 = vpop.f32.mrb[25].mxu1 }
 0x10f   :  { %v280_v54 = vadd.f32 %v279_v52, %v1813_v31  ;;  %v773_v55 = vadd.f32 %v772_v53, %v1868_v23  ;;  %v281_v56 = vpop.f32.mrb[26].mxu0  ;;  %v774_v57 = vpop.f32.mrb[26].mxu1 }
 0x110   :  { %v282_v58 = vadd.f32 %v281_v56, %v1805_v29  ;;  %v775_v59 = vadd.f32 %v774_v57, %v1863_v20  ;;  %v283_v60 = vpop.f32.mrb[27].mxu0  ;;  %v776_v61 = vpop.f32.mrb[27].mxu1 }
 0x111   :  { %v1410_v62 = vpack.c.bf16 %v280_v54, %v278_v50  ;;  %v1430_v63 = vpack.c.bf16 %v773_v55, %v771_v51  ;;  %v284_v0 = vadd.f32 %v283_v60, %v1813_v31  ;;  %v777_v1 = vadd.f32 %v776_v61, %v1868_v23 }
 0x113   :  { %653 = vst [vmem:[#allocation2 + $0x90] sm:$0xff] %v1410_v62  ;;  %1176 = vst [vmem:[#allocation4 + $0x18] sm:$0xff] %v1430_v63  ;;  %v1412_v2 = vpack.c.bf16 %v284_v0, %v282_v58  ;;  %v1432_v3 = vpack.c.bf16 %v777_v1, %v775_v59 }
 0x115   :  { %655 = vst [vmem:[#allocation2 + $0x9c] sm:$0xff] %v1412_v2  ;;  %1178 = vst [vmem:[#allocation4 + $0x24] sm:$0xff] %v1432_v3  ;;  %v287_v4 = vpop.f32.mrb[28].mxu0  ;;  %v780_v5 = vpop.f32.mrb[28].mxu1 }
 0x116   :  { %v288_v6 = vadd.f32 %v287_v4, %v1805_v29  ;;  %v781_v7 = vadd.f32 %v780_v5, %v1863_v20  ;;  %v289_v8 = vpop.f32.mrb[29].mxu0  ;;  %v782_v10 = vpop.f32.mrb[29].mxu1  ;;  %v1913_v5 = vrot.slane %v1854_v9, %v65_v26 }
 0x117   :  { %v290_v11 = vadd.f32 %v289_v8, %v1813_v31  ;;  %v783_v12 = vadd.f32 %v782_v10, %v1868_v23  ;;  %v291_v13 = vpop.f32.mrb[30].mxu0  ;;  %v784_v14 = vpop.f32.mrb[30].mxu1 }
 0x118   :  { %v292_v15 = vadd.f32 %v291_v13, %v1805_v29  ;;  %v785_v16 = vadd.f32 %v784_v14, %v1863_v20  ;;  %v293_v17 = vpop.f32.mrb[31].mxu0  ;;  %v786_v18 = vpop.f32.mrb[31].mxu1 }
 0x119   :  { %v1414_v19 = vpack.c.bf16 %v290_v11, %v288_v6  ;;  %v1434_v21 = vpack.c.bf16 %v783_v12, %v781_v7  ;;  %v294_v22 = vadd.f32 %v293_v17, %v1813_v31  ;;  %v787_v30 = vadd.f32 %v786_v18, %v1868_v23 }
 0x11b   :  { %657 = vst [vmem:[#allocation2 + $0xa8] sm:$0xff] %v1414_v19  ;;  %1180 = vst [vmem:[#allocation4 + $0x30] sm:$0xff] %v1434_v21  ;;  %v1416_v27 = vpack.c.bf16 %v294_v22, %v292_v15  ;;  %v1436_v32 = vpack.c.bf16 %v787_v30, %v785_v16 }
 0x11d   :  { %659 = vst [vmem:[#allocation2 + $0xb4] sm:$0xff] %v1416_v27  ;;  %1182 = vst [vmem:[#allocation4 + $0x3c] sm:$0xff] %v1436_v32  ;;  %v297_v33 = vpop.f32.mrb[32].mxu0  ;;  %v790_v25 = vpop.f32.mrb[32].mxu1 }
 0x11e   :  { %v298_v34 = vadd.f32 %v297_v33, %v1805_v29  ;;  %v791_v35 = vadd.f32 %v790_v25, %v1863_v20  ;;  %v299_v36 = vpop.f32.mrb[33].mxu0  ;;  %v792_v37 = vpop.f32.mrb[33].mxu1 }
 0x11f   :  { %v300_v38 = vadd.f32 %v299_v36, %v1813_v31  ;;  %v793_v28 = vadd.f32 %v792_v37, %v1868_v23  ;;  %v301_v39 = vpop.f32.mrb[34].mxu0  ;;  %v794_v40 = vpop.f32.mrb[34].mxu1 }
 0x120   :  { %v302_v41 = vadd.f32 %v301_v39, %v1805_v29  ;;  %v795_v42 = vadd.f32 %v794_v40, %v1863_v20  ;;  %v303_v43 = vpop.f32.mrb[35].mxu0  ;;  %v796_v44 = vpop.f32.mrb[35].mxu1 }
 0x121   :  { %v1418_v45 = vpack.c.bf16 %v300_v38, %v298_v34  ;;  %v1438_v46 = vpack.c.bf16 %v793_v28, %v791_v35  ;;  %v304_v47 = vadd.f32 %v303_v43, %v1813_v31  ;;  %v797_v48 = vadd.f32 %v796_v44, %v1868_v23 }
 0x123   :  { %661 = vst [vmem:[#allocation2 + $0xc0] sm:$0xff] %v1418_v45  ;;  %1184 = vst [vmem:[#allocation4 + $0x48] sm:$0xff] %v1438_v46  ;;  %v1420_v49 = vpack.c.bf16 %v304_v47, %v302_v41  ;;  %v1440_v50 = vpack.c.bf16 %v797_v48, %v795_v42 }
 0x125   :  { %663 = vst [vmem:[#allocation2 + $0xcc] sm:$0xff] %v1420_v49  ;;  %1186 = vst [vmem:[#allocation4 + $0x54] sm:$0xff] %v1440_v50  ;;  %v307_v51 = vpop.f32.mrb[36].mxu0  ;;  %v800_v52 = vpop.f32.mrb[36].mxu1 }
 0x126   :  { %v308_v53 = vadd.f32 %v307_v51, %v1805_v29  ;;  %v801_v54 = vadd.f32 %v800_v52, %v1863_v20  ;;  %v309_v55 = vpop.f32.mrb[37].mxu0  ;;  %v802_v56 = vpop.f32.mrb[37].mxu1 }
 0x127   :  { %v310_v57 = vadd.f32 %v309_v55, %v1813_v31  ;;  %v803_v58 = vadd.f32 %v802_v56, %v1868_v23  ;;  %v311_v59 = vpop.f32.mrb[38].mxu0  ;;  %v804_v60 = vpop.f32.mrb[38].mxu1 }
 0x128   :  { %v312_v61 = vadd.f32 %v311_v59, %v1805_v29  ;;  %v805_v62 = vadd.f32 %v804_v60, %v1863_v20  ;;  %v313_v63 = vpop.f32.mrb[39].mxu0  ;;  %v806_v0 = vpop.f32.mrb[39].mxu1 }
 0x129   :  { %v1422_v1 = vpack.c.bf16 %v310_v57, %v308_v53  ;;  %v1442_v2 = vpack.c.bf16 %v803_v58, %v801_v54  ;;  %v314_v3 = vadd.f32 %v313_v63, %v1813_v31  ;;  %v807_v4 = vadd.f32 %v806_v0, %v1868_v23 }
 0x12b   :  { %665 = vst [vmem:[#allocation2 + $0xd8] sm:$0xff] %v1422_v1  ;;  %1188 = vst [vmem:[#allocation4 + $0x60] sm:$0xff] %v1442_v2  ;;  %v1424_v29 = vpack.c.bf16 %v314_v3, %v312_v61  ;;  %v1444_v6 = vpack.c.bf16 %v807_v4, %v805_v62 }
 0x12d   :  { %667 = vst [vmem:[#allocation2 + $0xe4] sm:$0xff] %v1424_v29  ;;  %1190 = vst [vmem:[#allocation4 + $0x6c] sm:$0xff] %v1444_v6  ;;  %v810_v7 = vpop.f32.mrb[40].mxu1  ;;  %v1520_v31 = vpop.f32.mrb[40].mxu0 }
 0x12e   :  { %v811_v8 = vadd.f32 %v810_v7, %v1863_v20  ;;  %v902_v24 = vadd.f32 %v1520_v31, %v1913_v5  ;;  %v812_v10 = vpop.f32.mrb[41].mxu1  ;;  %v893_v26 = vpop.f32.mrb[41].mxu0 }
 0x12f   :  { %1580 = shalt.err (!%p1577_p4)
}
 0x130   :  { %s1581_s20 = scalar_lea.hbm %s1997_s5, 3840 }
 0x131   :  { %p1582_p5 = scmp.ne.s32.totalorder %s1997_s5, %s1581_s20  ;;  %p1585_p6 = scmp.lt.u32.totalorder %s1581_s20, %s1997_s5 }
 0x133   :  { %p1587_p7 = pnand %p1585_p6, %p1582_p5 }
 0x135   :  { %1590 = shalt.err (!%p1587_p7)
}
 0x136   :  { %s1619_s25 = smov 192   ;;  %s1620_s26 = smov 12   ;;  %v813_v9 = vadd.f32 %v812_v10, %v1868_v23  ;;  %v894_v11 = vadd.f32 %v893_v26, %v1913_v5  ;;  %v814_v12 = vpop.f32.mrb[42].mxu1  ;;  %v1521_v13 = vpop.f32.mrb[42].mxu0  ;;  %v1431_v14 = vpack.c.bf16 %v902_v24, %v902_v24 }
 0x137   :  { %1223 = dma.vmem_to_hbm [thread:$0]  %s1915_s16, 3840, %s1997_s5, [#allocation3], %s1619_s25, %s1619_s25, %s1620_s26   ;;  %v815_v15 = vadd.f32 %v814_v12, %v1863_v20  ;;  %v905_v16 = vadd.f32 %v1521_v13, %v1913_v5  ;;  %v816_v17 = vpop.f32.mrb[43].mxu1  ;;  %v896_v18 = vpop.f32.mrb[43].mxu0 }
 0x138   :  { %v1446_v19 = vpack.c.bf16 %v813_v9, %v811_v8  ;;  %v1427_v21 = vpack.c.bf16 %v894_v11, %v894_v11  ;;  %v817_v22 = vadd.f32 %v816_v17, %v1868_v23  ;;  %v897_v30 = vadd.f32 %v896_v18, %v1913_v5  ;;  %1177 = vst [vmem:[#allocation4 + $0x20] sm:$0xf] %v1431_v14  ;;  %v820_v25 = vpop.f32.mrb[44].mxu1  ;;  %v1524_v34 = vpop.f32.mrb[44].mxu0  ;;  %s1621_s5 = smov [#allocation4]  }
 0x139   :  { %v1433_v27 = vpack.c.bf16 %v905_v16, %v905_v16  ;;  %v821_v35 = vadd.f32 %v820_v25, %v1863_v20  ;;  %v918_v36 = vadd.f32 %v1524_v34, %v1913_v5  ;;  %v822_v37 = vpop.f32.mrb[45].mxu1  ;;  %v909_v38 = vpop.f32.mrb[45].mxu0  ;;  %s1229_s29 = sshll.u32 %s1621_s5, 4  ;;  %s1230_s29 = int_to_ptr.vmem [resolvable:$true] %s1229_s29 }
 0x13a   :  { %1192 = vst [vmem:[#allocation4 + $0x78] sm:$0xff] %v1446_v19  ;;  %1173 = vst [vmem:[#allocation4 + $0x8] sm:$0xf] %v1427_v21  ;;  %v1448_v32 = vpack.c.bf16 %v817_v22, %v815_v15  ;;  %v1429_v33 = vpack.c.bf16 %v897_v30, %v897_v30  ;;  %v823_v28 = vadd.f32 %v822_v37, %v1868_v23  ;;  %v824_v40 = vpop.f32.mrb[46].mxu1  ;;  %v1525_v41 = vpop.f32.mrb[46].mxu0  ;;  %s1591_s30 = scalar_lea.vmem %s1230_s29, 3840  ;;  %p1596_p9 = scmp.lt.s32.totalorder %s1230_s29, %s1230_s29 }
 0x13b   :  { %1179 = vst [vmem:[#allocation4 + $0x2c] sm:$0xf] %v1433_v27  ;;  %v910_v39 = vadd.f32 %v909_v38, %v1913_v5  ;;  %v1439_v42 = vpack.c.bf16 %v918_v36, %v918_v36  ;;  %v825_v43 = vadd.f32 %v824_v40, %v1863_v20  ;;  %v921_v44 = vadd.f32 %v1525_v41, %v1913_v5  ;;  %v826_v45 = vpop.f32.mrb[47].mxu1  ;;  %v912_v46 = vpop.f32.mrb[47].mxu0  ;;  %p1592_p8 = scmp.ne.s32.totalorder %s1230_s29, %s1591_s30  ;;  %p1597_p10 = scmp.lt.s32.totalorder %s1591_s30, %s1591_s30 }
 0x13c   :  { %1194 = vst [vmem:[#allocation4 + $0x84] sm:$0xff] %v1448_v32  ;;  %1175 = vst [vmem:[#allocation4 + $0x14] sm:$0xf] %v1429_v33  ;;  %v1450_v47 = vpack.c.bf16 %v823_v28, %v821_v35  ;;  %v827_v49 = vadd.f32 %v826_v45, %v1868_v23  ;;  %v913_v50 = vadd.f32 %v912_v46, %v1913_v5 }
 0x13d   :  { %v1435_v48 = vpack.c.bf16 %v910_v39, %v910_v39  ;;  %1185 = vst [vmem:[#allocation4 + $0x50] sm:$0xf] %v1439_v42  ;;  %v1441_v51 = vpack.c.bf16 %v921_v44, %v921_v44  ;;  %v830_v54 = vpop.f32.mrb[48].mxu1  ;;  %v1528_v55 = vpop.f32.mrb[48].mxu0  ;;  %p1598_p11 = por %p1597_p10, %p1596_p9 }
 0x13e   :  { %1196 = vst [vmem:[#allocation4 + $0x90] sm:$0xff] %v1450_v47  ;;  %v1452_v52 = vpack.c.bf16 %v827_v49, %v825_v43  ;;  %v1437_v53 = vpack.c.bf16 %v913_v50, %v913_v50  ;;  %v831_v56 = vadd.f32 %v830_v54, %v1863_v20  ;;  %v934_v57 = vadd.f32 %v1528_v55, %v1913_v5  ;;  %v832_v58 = vpop.f32.mrb[49].mxu1  ;;  %v925_v59 = vpop.f32.mrb[49].mxu0 }
 0x13f   :  { %1181 = vst [vmem:[#allocation4 + $0x38] sm:$0xf] %v1435_v48  ;;  %1187 = vst [vmem:[#allocation4 + $0x5c] sm:$0xf] %v1441_v51  ;;  %v833_v60 = vadd.f32 %v832_v58, %v1868_v23  ;;  %v926_v61 = vadd.f32 %v925_v59, %v1913_v5  ;;  %v834_v62 = vpop.f32.mrb[50].mxu1  ;;  %v1529_v63 = vpop.f32.mrb[50].mxu0  ;;  %p1599_p12 = pnand %p1598_p11, %p1592_p8 }
 0x140   :  { %1198 = vst [vmem:[#allocation4 + $0x9c] sm:$0xff] %v1452_v52  ;;  %1183 = vst [vmem:[#allocation4 + $0x44] sm:$0xf] %v1437_v53  ;;  %v1447_v0 = vpack.c.bf16 %v934_v57, %v934_v57  ;;  %v835_v1 = vadd.f32 %v834_v62, %v1863_v20  ;;  %v937_v2 = vadd.f32 %v1529_v63, %v1913_v5  ;;  %v836_v3 = vpop.f32.mrb[51].mxu1  ;;  %v928_v4 = vpop.f32.mrb[51].mxu0 }
 0x141   :  { %v1454_v29 = vpack.c.bf16 %v833_v60, %v831_v56  ;;  %v1443_v6 = vpack.c.bf16 %v926_v61, %v926_v61  ;;  %v837_v7 = vadd.f32 %v836_v3, %v1868_v23  ;;  %v929_v31 = vadd.f32 %v928_v4, %v1913_v5 }
 0x142   :  { %1193 = vst [vmem:[#allocation4 + $0x80] sm:$0xf] %v1447_v0  ;;  %v1449_v8 = vpack.c.bf16 %v937_v2, %v937_v2 }
 0x143   :  { %1200 = vst [vmem:[#allocation4 + $0xa8] sm:$0xff] %v1454_v29  ;;  %1189 = vst [vmem:[#allocation4 + $0x68] sm:$0xf] %v1443_v6  ;;  %v1456_v24 = vpack.c.bf16 %v837_v7, %v835_v1  ;;  %v1445_v10 = vpack.c.bf16 %v929_v31, %v929_v31 }
 0x144   :  { %1195 = vst [vmem:[#allocation4 + $0x8c] sm:$0xf] %v1449_v8 }
 0x145   :  { %1202 = vst [vmem:[#allocation4 + $0xb4] sm:$0xff] %v1456_v24  ;;  %1191 = vst [vmem:[#allocation4 + $0x74] sm:$0xf] %v1445_v10  ;;  %v840_v26 = vpop.f32.mrb[52].mxu1  ;;  %v1532_v9 = vpop.f32.mrb[52].mxu0 }
 0x146   :  { %v841_v11 = vadd.f32 %v840_v26, %v1863_v20  ;;  %v950_v12 = vadd.f32 %v1532_v9, %v1913_v5  ;;  %v842_v13 = vpop.f32.mrb[53].mxu1  ;;  %v941_v14 = vpop.f32.mrb[53].mxu0 }
 0x147   :  { %v843_v15 = vadd.f32 %v842_v13, %v1868_v23  ;;  %v942_v16 = vadd.f32 %v941_v14, %v1913_v5  ;;  %v844_v17 = vpop.f32.mrb[54].mxu1  ;;  %v1533_v18 = vpop.f32.mrb[54].mxu0 }
 0x148   :  { %v1455_v19 = vpack.c.bf16 %v950_v12, %v950_v12  ;;  %v845_v21 = vadd.f32 %v844_v17, %v1863_v20  ;;  %v953_v22 = vadd.f32 %v1533_v18, %v1913_v5  ;;  %v846_v30 = vpop.f32.mrb[55].mxu1  ;;  %v944_v27 = vpop.f32.mrb[55].mxu0 }
 0x149   :  { %v1458_v32 = vpack.c.bf16 %v843_v15, %v841_v11  ;;  %v1451_v33 = vpack.c.bf16 %v942_v16, %v942_v16  ;;  %v847_v25 = vadd.f32 %v846_v30, %v1868_v23  ;;  %v945_v34 = vadd.f32 %v944_v27, %v1913_v5 }
 0x14a   :  { %1201 = vst [vmem:[#allocation4 + $0xb0] sm:$0xf] %v1455_v19  ;;  %v1457_v35 = vpack.c.bf16 %v953_v22, %v953_v22 }
 0x14b   :  { %1204 = vst [vmem:[#allocation4 + $0xc0] sm:$0xff] %v1458_v32  ;;  %1197 = vst [vmem:[#allocation4 + $0x98] sm:$0xf] %v1451_v33  ;;  %v1460_v36 = vpack.c.bf16 %v847_v25, %v845_v21  ;;  %v1453_v37 = vpack.c.bf16 %v945_v34, %v945_v34 }
 0x14c   :  { %1203 = vst [vmem:[#allocation4 + $0xbc] sm:$0xf] %v1457_v35 }
 0x14d   :  { %1206 = vst [vmem:[#allocation4 + $0xcc] sm:$0xff] %v1460_v36  ;;  %1199 = vst [vmem:[#allocation4 + $0xa4] sm:$0xf] %v1453_v37  ;;  %v850_v38 = vpop.f32.mrb[56].mxu1  ;;  %v1536_v28 = vpop.f32.mrb[56].mxu0 }
 0x14e   :  { %v851_v39 = vadd.f32 %v850_v38, %v1863_v20  ;;  %v966_v40 = vadd.f32 %v1536_v28, %v1913_v5  ;;  %v852_v41 = vpop.f32.mrb[57].mxu1  ;;  %v957_v42 = vpop.f32.mrb[57].mxu0 }
 0x14f   :  { %v853_v43 = vadd.f32 %v852_v41, %v1868_v23  ;;  %v958_v44 = vadd.f32 %v957_v42, %v1913_v5  ;;  %v854_v45 = vpop.f32.mrb[58].mxu1  ;;  %v1537_v46 = vpop.f32.mrb[58].mxu0 }
 0x150   :  { %v1463_v47 = vpack.c.bf16 %v966_v40, %v966_v40  ;;  %v855_v48 = vadd.f32 %v854_v45, %v1863_v20  ;;  %v969_v49 = vadd.f32 %v1537_v46, %v1913_v5  ;;  %v856_v50 = vpop.f32.mrb[59].mxu1  ;;  %v960_v51 = vpop.f32.mrb[59].mxu0 }
 0x151   :  { %v1462_v52 = vpack.c.bf16 %v853_v43, %v851_v39  ;;  %v1459_v53 = vpack.c.bf16 %v958_v44, %v958_v44  ;;  %v857_v54 = vadd.f32 %v856_v50, %v1868_v23  ;;  %v961_v55 = vadd.f32 %v960_v51, %v1913_v5 }
 0x152   :  { %1209 = vst [vmem:[#allocation4 + $0xe0] sm:$0xf] %v1463_v47  ;;  %v1465_v56 = vpack.c.bf16 %v969_v49, %v969_v49 }
 0x153   :  { %1208 = vst [vmem:[#allocation4 + $0xd8] sm:$0xff] %v1462_v52  ;;  %1205 = vst [vmem:[#allocation4 + $0xc8] sm:$0xf] %v1459_v53  ;;  %v1464_v57 = vpack.c.bf16 %v857_v54, %v855_v48  ;;  %v1461_v58 = vpack.c.bf16 %v961_v55, %v961_v55 }
 0x154   :  { %1211 = vst [vmem:[#allocation4 + $0xec] sm:$0xf] %v1465_v56 }
 0x155   :  { %1210 = vst [vmem:[#allocation4 + $0xe4] sm:$0xff] %v1464_v57  ;;  %1207 = vst [vmem:[#allocation4 + $0xd4] sm:$0xf] %v1461_v58 }
 0x156   :  { %1602 = shalt.err (!%p1599_p12)
}
 0x157   :  { %s1603_s9 = scalar_lea.hbm %s1998_s6, 3840 }
 0x158   :  { %p1604_p13 = scmp.ne.s32.totalorder %s1998_s6, %s1603_s9  ;;  %p1607_p0 = scmp.lt.u32.totalorder %s1603_s9, %s1998_s6 }
 0x15a   :  { %p1609_p1 = pnand %p1607_p0, %p1604_p13 }
 0x15c   :  { %1612 = shalt.err (!%p1609_p1)
}
 0x15d   :  { %1235 = dma.vmem_to_hbm [thread:$0]  %s1230_s29, 3840, %s1998_s6, [#allocation5], %s1619_s25, %s1619_s25, %s1620_s26  }
 0x15e   :  { %1613 = dma.done.wait [#allocation3], 3840  }
 0x15f   :  { %1614 = vsyncadd [#allocation3], 4294963456 }
 0x160   :  { %1615 = dma.done.wait [#allocation5], 3840  }
 0x161   :  { %1616 = vsyncadd [#allocation5], 4294963456 }
 0x162   :  { %1242 = vsyncpa [#allocation3], 1 }
 0x163   :  { %1243 = vsyncpa [#allocation5], 1 }

</bundles_post_ra>
